<compile_context>
chip_gen: v7x
topology: tpu7x:2x2x1
jax: 0.10.0
libtpu: 0.0.40
codegen_flags: <defaults>
</compile_context>

<pallas_src>
import functools

import jax
import jax.numpy as jnp
from jax import lax
from jax.experimental import pallas as pl
from jax.experimental.pallas import tpu as pltpu


# ----------------------------- tiling helpers --------------------------------

def _round_up(v, m):
    return ((v + m - 1) // m) * m


def _sublane(itemsize):
    # Minimum sublane tile: 8 for 32-bit, 16 for bf16, 32 for int8.
    return 8 * max(1, 4 // max(1, itemsize))


def _vmem_capacity_bytes():
    try:
        return int(pltpu.get_tpu_info().vmem_capacity_bytes)
    except Exception:
        return 64 << 20          # conservative fallback (v7x per-TC VMEM)


def _tile_budget_bytes():
    # Activation-tile budget scales with chip VMEM (v5e/v6e 128 MiB, v7x 64 MiB),
    # leaving room for resident constants and Mosaic internal scratch.
    return max(8 << 20, min(48 << 20, _vmem_capacity_bytes() // 3))


def _pick_row_tile(rows, want, bytes_per_row, *, sublane=8, budget_bytes):
    """Largest row tile (multiple of `sublane`) whose double-buffered
    activation tiles stay under `budget_bytes`, capped by `want` / problem
    size, and capped at ~rows/2 so the grid has >= 2 blocks (v7x megacore)."""
    cap = max(sublane, budget_bytes // max(1, 2 * bytes_per_row))
    tr = min(want, cap, _round_up(rows, sublane))
    if rows > sublane:
        half = max(sublane, (((rows + 1) // 2) // sublane) * sublane)
        tr = min(tr, half)
    return max(sublane, (tr // sublane) * sublane)


def _mosaic_params(double_buffered_tile_bytes, const_bytes):
    # Explicit VMEM limit with headroom below physical capacity (matters on
    # v7x's 64 MiB); on v5e/v6e this also overrides the small scoped default.
    cap = _vmem_capacity_bytes() - (8 << 20)
    est = double_buffered_tile_bytes + 2 * const_bytes + (4 << 20)
    limit = int(max(16 << 20, min(cap, est)))
    return pltpu.CompilerParams(dimension_semantics=("parallel",),
                                vmem_limit_bytes=limit)


# ------------------------------ LayerNorm math --------------------------------

def _ln_rows(x, gamma, beta, eps):
    """Row-wise LayerNorm in f32; x: (R, D), gamma/beta: (1, D) f32."""
    xf = x.astype(jnp.float32)
    mean = jnp.mean(xf, axis=-1, keepdims=True)
    centered = xf - mean
    var = jnp.mean(centered * centered, axis=-1, keepdims=True)
    return centered * lax.rsqrt(var + eps) * gamma + beta


# ------------------------ standalone LayerNorm kernel -------------------------

def _layernorm_kernel(x_ref, g_ref, b_ref, o_ref, *, eps):
    o_ref[...] = _ln_rows(x_ref[...], g_ref[...], b_ref[...], eps).astype(o_ref.dtype)


def layernorm(x, gamma, beta, *, eps=1e-5, row_tile=2048):
    """LayerNorm over the last dim of x (any leading dims, ragged rows OK).

    No wrapper-side padding: a non-divisible last row-block is handled by the
    grid (OOB reads feed only rows whose stores are masked; rows are
    independent so valid rows are unaffected)."""
    orig_shape = x.shape
    d = orig_shape[-1]
    x2 = x.reshape(-1, d)
    rows = x2.shape[0]

    itemsize = jnp.dtype(x.dtype).itemsize
    sub = _sublane(itemsize)
    bytes_per_row = 2 * d * itemsize                    # input tile + output tile
    tr = _pick_row_tile(rows, row_tile, bytes_per_row, sublane=sub,
                        budget_bytes=_tile_budget_bytes())
    n_blocks = pl.cdiv(rows, tr)

    out = pl.pallas_call(
        functools.partial(_layernorm_kernel, eps=eps),
        out_shape=jax.ShapeDtypeStruct((rows, d), x.dtype),
        grid_spec=pltpu.PrefetchScalarGridSpec(
            num_scalar_prefetch=0,
            grid=(n_blocks,),
            in_specs=[
                pl.BlockSpec((tr, d), lambda i: (i, 0)),
                pl.BlockSpec((1, d), lambda i: (0, 0)),
                pl.BlockSpec((1, d), lambda i: (0, 0)),
            ],
            out_specs=pl.BlockSpec((tr, d), lambda i: (i, 0)),
        ),
        compiler_params=_mosaic_params(2 * tr * bytes_per_row, 2 * d * 4),
    )(x2,
      gamma.reshape(1, d).astype(jnp.float32),
      beta.reshape(1, d).astype(jnp.float32))
    return out.reshape(orig_shape)


# ----------------------- fused PreNorm + linear mixer kernel ------------------
#
#   out = LN(x) @ Wx + LN(ctx) @ Wc + bias          (single pallas_call)
#
# LN epilogue feeds the MXU directly (no HBM round-trip of normalized
# activations). The two matmuls are merged into ONE bf16 contraction:
#   act = [ LN(x) | 0-pad | LN(ctx) | 0-pad ]   (TR, Dp + DCp), lane-aligned
#   W   = [ Wx ; 0 ; Wc ; 0 ]                   (Dp + DCp, d_out), bf16
# so the MXU sees a single K-deep (K multiple of 128) contraction instead of a
# K=128 dot plus an underfilled K=64 dot. Accumulation stays f32.

def _fused_prenorm_kernel(x_ref, c_ref, gx_ref, bx_ref, gc_ref, bc_ref,
                          w_ref, bias_ref, o_ref, act_ref, *,
                          eps, d, dc, dp, dcp):
    xn = _ln_rows(x_ref[...], gx_ref[...], bx_ref[...], eps)        # (TR, D)  f32
    cn = _ln_rows(c_ref[...], gc_ref[...], bc_ref[...], eps)        # (TR, DC) f32

    # Assemble the lane-padded, bf16 activation slab for the merged matmul.
    act_ref[:, :d] = xn.astype(act_ref.dtype)
    act_ref[:, dp:dp + dc] = cn.astype(act_ref.dtype)
    # Padding columns must be zero every step: scratch is uninitialized (and
    # per-core under megacore sharding); NaN garbage * zero-weight = NaN.
    if dp > d:
        act_ref[:, d:dp] = jnp.zeros((act_ref.shape[0], dp - d), act_ref.dtype)
    if dcp > dc:
        act_ref[:, dp + dc:] = jnp.zeros((act_ref.shape[0], dcp - dc), act_ref.dtype)

    y = jnp.dot(act_ref[...], w_ref[...], preferred_element_type=jnp.float32)
    o_ref[...] = (y + bias_ref[...]).astype(o_ref.dtype)


def fused_prenorm_linear(x, context, norm_g, norm_b, ctx_g, ctx_b,
                         wx, wc, bias, *, eps=1e-5, row_tile=2048,
                         mxu_dtype=jnp.bfloat16):
    B, N, D = x.shape
    Bc, M, DC = context.shape
    # This fused path is specific to the demo mixer (adds x- and context-
    # derived terms), so it needs matching token counts. The generic PreNorm
    # class below handles the usual Perceiver cross-attention case (N != M).
    assert (B, N) == (Bc, M), "fused mixer adds x and context -> same (batch, seq)"
    d_out = wx.shape[1]
    assert wx.shape == (D, d_out) and wc.shape == (DC, d_out)

    Dp = _round_up(D, 128)
    DCp = _round_up(DC, 128)
    K = Dp + DCp

    # Stacked bf16 weight for the single merged contraction (zero rows in the
    # lane-padding of each section; also halves weight DMA bytes vs f32).
    w_all = jnp.zeros((K, d_out), mxu_dtype)
    w_all = w_all.at[:D].set(wx.astype(mxu_dtype))
    w_all = w_all.at[Dp:Dp + DC].set(wc.astype(mxu_dtype))

    rows = B * N
    x2 = x.reshape(rows, D)
    c2 = context.reshape(rows, DC)

    itemsize = jnp.dtype(x.dtype).itemsize
    mxu_item = jnp.dtype(mxu_dtype).itemsize
    sub = _sublane(itemsize)
    # x/ctx/out tiles (double-buffered) + the single-buffered act scratch.
    bytes_per_row = (D + DC + d_out) * itemsize + K * mxu_item
    tr = _pick_row_tile(rows, row_tile, bytes_per_row, sublane=sub,
                        budget_bytes=_tile_budget_bytes())
    n_blocks = pl.cdiv(rows, tr)

    # Constants (gamma/beta/W/bias) are tiny here (<0.1 MiB), so the default
    # double-buffering waste is negligible; for large d_out add a d_out grid
    # axis instead of keeping the full weight resident.
    # TODO(synk): add a second grid axis over d_out (tile 256 on v6e/v7x,
    # 128 on v5e) once d_out > 128 so weight VMEM stays bounded.
    const_bytes = (w_all.size * mxu_item + (2 * D + 2 * DC + d_out) * 4)

    out = pl.pallas_call(
        functools.partial(_fused_prenorm_kernel, eps=eps, d=D, dc=DC,
                          dp=Dp, dcp=DCp),
        out_shape=jax.ShapeDtypeStruct((rows, d_out), x.dtype),
        grid_spec=pltpu.PrefetchScalarGridSpec(
            num_scalar_prefetch=0,
            grid=(n_blocks,),
            in_specs=[
                pl.BlockSpec((tr, D), lambda i: (i, 0)),       # x rows
                pl.BlockSpec((tr, DC), lambda i: (i, 0)),      # context rows
                pl.BlockSpec((1, D), lambda i: (0, 0)),        # gamma_x
                pl.BlockSpec((1, D), lambda i: (0, 0)),        # beta_x
                pl.BlockSpec((1, DC), lambda i: (0, 0)),       # gamma_ctx
                pl.BlockSpec((1, DC), lambda i: (0, 0)),       # beta_ctx
                pl.BlockSpec((K, d_out), lambda i: (0, 0)),    # stacked bf16 W
                pl.BlockSpec((1, d_out), lambda i: (0, 0)),    # bias
            ],
            out_specs=pl.BlockSpec((tr, d_out), lambda i: (i, 0)),
            scratch_shapes=[pltpu.VMEM((tr, K), mxu_dtype)],   # concat slab
        ),
        compiler_params=_mosaic_params(2 * tr * bytes_per_row, const_bytes),
    )(x2, c2,
      norm_g.reshape(1, D).astype(jnp.float32),
      norm_b.reshape(1, D).astype(jnp.float32),
      ctx_g.reshape(1, DC).astype(jnp.float32),
      ctx_b.reshape(1, DC).astype(jnp.float32),
      w_all, bias.reshape(1, d_out))
    return out.reshape(B, N, d_out)


# ---------------------------------- PreNorm -----------------------------------

class PreNorm:
    """JAX/Pallas port of the PyTorch PreNorm module (generic `fn` path)."""

    def __init__(self, dim, fn, context_dim=None, *, key=None):
        self.fn = fn
        k = jax.random.PRNGKey(0) if key is None else key
        k1, k2, k3, k4 = jax.random.split(k, 4)
        # PyTorch default init is ones/zeros; small deterministic perturbations
        # exercise the scale/shift paths.
        self.norm_g = 1.0 + 0.1 * jax.random.normal(k1, (dim,), jnp.float32)
        self.norm_b = 0.1 * jax.random.normal(k2, (dim,), jnp.float32)
        if context_dim is not None:
            self.ctx_g = 1.0 + 0.1 * jax.random.normal(k3, (context_dim,), jnp.float32)
            self.ctx_b = 0.1 * jax.random.normal(k4, (context_dim,), jnp.float32)
        else:
            self.ctx_g = None
            self.ctx_b = None

    def __call__(self, x, **kwargs):
        x = layernorm(x, self.norm_g, self.norm_b)
        if self.ctx_g is not None:
            context = kwargs["context"]
            normed_context = layernorm(context, self.ctx_g, self.ctx_b)
            kwargs = dict(kwargs, context=normed_context)
        return self.fn(x, **kwargs)


# ------------------------------------ main ------------------------------------

if __name__ == "__main__":
    # x: latents (B, N, D); context: (B, M, DC).  D=128 keeps LN math, matmul
    # and output stores lane-dense; DC=64 exercises a different context width
    # (the fused kernel lane-pads it to 128 before the merged MXU contraction).
    B, N, D = 2, 8, 128
    M, DC = 8, 64

    key = jax.random.PRNGKey(0)
    kx, kc, kw1, kw2, kb, kp = jax.random.split(key, 6)
    x = jax.random.normal(kx, (B, N, D), jnp.float32)
    context = jax.random.normal(kc, (B, M, DC), jnp.float32)

    # fn: small deterministic mixer using both x and context:
    #   fn(x, context) = x @ Wx + context @ Wc + bias
    Wx = 0.1 * jax.random.normal(kw1, (D, D), jnp.float32)
    Wc = 0.1 * jax.random.normal(kw2, (DC, D), jnp.float32)
    bias = 0.1 * jax.random.normal(kb, (D,), jnp.float32)

    def mixer(xn, context):
        return xn @ Wx + bias + context @ Wc

    prenorm = PreNorm(D, mixer, context_dim=DC, key=kp)

    # --- fused production path: single pallas_call for the whole forward -----
    out = fused_prenorm_linear(x, context,
                               prenorm.norm_g, prenorm.norm_b,
                               prenorm.ctx_g, prenorm.ctx_b,
                               Wx, Wc, bias)
    jax.block_until_ready(out)

    # --- checks ---------------------------------------------------------------
    # Generic (unfused) PreNorm path: Pallas LayerNorm kernels + external fn.
    out_generic = prenorm(x, context=context)

    # Plain-JAX f32 reference (same math).
    def ln_ref(v, g, b, eps=1e-5):
        mu = jnp.mean(v, axis=-1, keepdims=True)
        var = jnp.mean((v - mu) ** 2, axis=-1, keepdims=True)
        return (v - mu) / jnp.sqrt(var + eps) * g + b

    ref = (ln_ref(x, prenorm.norm_g, prenorm.norm_b) @ Wx + bias
           + ln_ref(context, prenorm.ctx_g, prenorm.ctx_b) @ Wc)

    # Fused path runs the matmul in bf16 (f32 accumulation) -> looser tolerance
    # than the pure-f32 generic path (expected precision loss, not a bug).
    assert jnp.allclose(out, ref, atol=3e-2, rtol=3e-2), "fused kernel mismatch"
    assert jnp.allclose(out_generic, ref, atol=1e-4, rtol=1e-4), "generic path mismatch"

    print("KERNEL_OK")
</pallas_src>

<mosaic_0001>
module attributes {stable_mosaic.version = 11 : i64} {
  func.func @_fused_prenorm_kernel(%arg0: i32, %arg1: memref<8x128xf32, #tpu.memory_space<vmem>>, %arg2: memref<8x64xf32, #tpu.memory_space<vmem>>, %arg3: memref<1x128xf32, #tpu.memory_space<vmem>>, %arg4: memref<1x128xf32, #tpu.memory_space<vmem>>, %arg5: memref<1x64xf32, #tpu.memory_space<vmem>>, %arg6: memref<1x64xf32, #tpu.memory_space<vmem>>, %arg7: memref<256x128xbf16, #tpu.memory_space<vmem>>, %arg8: memref<1x128xf32, #tpu.memory_space<vmem>>, %arg9: memref<8x128xf32, #tpu.memory_space<vmem>>, %arg10: memref<8x256xbf16, #tpu.memory_space<vmem>>) attributes {dimension_semantics = [#tpu.dimension_semantics<parallel>], iteration_bounds = array<i64: 2>, scalar_prefetch = 0 : i64, scratch_operands = 1 : i64, tpu.core_type = #tpu.core_type<tc>, window_params = [{transform_indices = @transform_0, window_bounds = array<i64: 8, 128>}, {transform_indices = @transform_1, window_bounds = array<i64: 8, 64>}, {pipeline_mode = #tpu.pipeline_mode<synchronous>, transform_indices = @transform_2, window_bounds = array<i64: 1, 128>}, {pipeline_mode = #tpu.pipeline_mode<synchronous>, transform_indices = @transform_3, window_bounds = array<i64: 1, 128>}, {pipeline_mode = #tpu.pipeline_mode<synchronous>, transform_indices = @transform_4, window_bounds = array<i64: 1, 64>}, {pipeline_mode = #tpu.pipeline_mode<synchronous>, transform_indices = @transform_5, window_bounds = array<i64: 1, 64>}, {pipeline_mode = #tpu.pipeline_mode<synchronous>, transform_indices = @transform_6, window_bounds = array<i64: 256, 128>}, {pipeline_mode = #tpu.pipeline_mode<synchronous>, transform_indices = @transform_7, window_bounds = array<i64: 1, 128>}, {transform_indices = @transform_8, window_bounds = array<i64: 8, 128>}]} {
    %c0 = arith.constant 0 : index
    %c0_0 = arith.constant 0 : index
    %0 = vector.load %arg1[%c0, %c0_0] : memref<8x128xf32, #tpu.memory_space<vmem>>, vector<8x128xf32>
    %c0_1 = arith.constant 0 : index
    %c0_2 = arith.constant 0 : index
    %1 = vector.load %arg3[%c0_1, %c0_2] : memref<1x128xf32, #tpu.memory_space<vmem>>, vector<1x128xf32>
    %c0_3 = arith.constant 0 : index
    %c0_4 = arith.constant 0 : index
    %2 = vector.load %arg4[%c0_3, %c0_4] : memref<1x128xf32, #tpu.memory_space<vmem>>, vector<1x128xf32>
    %cst = arith.constant dense<0.000000e+00> : vector<8xf32>
    %3 = vector.multi_reduction <add>, %0, %cst [1] : vector<8x128xf32> to vector<8xf32>
    %4 = vector.shape_cast %3 : vector<8xf32> to vector<8x1xf32>
    %cst_5 = arith.constant 1.280000e+02 : f32
    %5 = vector.broadcast %cst_5 : f32 to vector<8x1xf32>
    %6 = arith.divf %4, %5 : vector<8x1xf32>
    %7 = vector.broadcast %6 : vector<8x1xf32> to vector<8x128xf32>
    %8 = arith.subf %0, %7 : vector<8x128xf32>
    %9 = arith.mulf %8, %8 : vector<8x128xf32>
    %cst_6 = arith.constant dense<0.000000e+00> : vector<8xf32>
    %10 = vector.multi_reduction <add>, %9, %cst_6 [1] : vector<8x128xf32> to vector<8xf32>
    %11 = vector.shape_cast %10 : vector<8xf32> to vector<8x1xf32>
    %cst_7 = arith.constant 1.280000e+02 : f32
    %12 = vector.broadcast %cst_7 : f32 to vector<8x1xf32>
    %13 = arith.divf %11, %12 : vector<8x1xf32>
    %cst_8 = arith.constant 9.99999974E-6 : f32
    %14 = vector.broadcast %cst_8 : f32 to vector<8x1xf32>
    %15 = arith.addf %13, %14 : vector<8x1xf32>
    %16 = math.rsqrt %15 : vector<8x1xf32>
    %17 = vector.broadcast %16 : vector<8x1xf32> to vector<8x128xf32>
    %18 = arith.mulf %8, %17 : vector<8x128xf32>
    %19 = vector.broadcast %1 : vector<1x128xf32> to vector<8x128xf32>
    %20 = arith.mulf %18, %19 : vector<8x128xf32>
    %21 = vector.broadcast %2 : vector<1x128xf32> to vector<8x128xf32>
    %22 = arith.addf %20, %21 : vector<8x128xf32>
    %c0_9 = arith.constant 0 : index
    %c0_10 = arith.constant 0 : index
    %23 = vector.load %arg2[%c0_9, %c0_10] : memref<8x64xf32, #tpu.memory_space<vmem>>, vector<8x64xf32>
    %c0_11 = arith.constant 0 : index
    %c0_12 = arith.constant 0 : index
    %24 = vector.load %arg5[%c0_11, %c0_12] : memref<1x64xf32, #tpu.memory_space<vmem>>, vector<1x64xf32>
    %c0_13 = arith.constant 0 : index
    %c0_14 = arith.constant 0 : index
    %25 = vector.load %arg6[%c0_13, %c0_14] : memref<1x64xf32, #tpu.memory_space<vmem>>, vector<1x64xf32>
    %cst_15 = arith.constant dense<0.000000e+00> : vector<8xf32>
    %26 = vector.multi_reduction <add>, %23, %cst_15 [1] : vector<8x64xf32> to vector<8xf32>
    %27 = vector.shape_cast %26 : vector<8xf32> to vector<8x1xf32>
    %cst_16 = arith.constant 6.400000e+01 : f32
    %28 = vector.broadcast %cst_16 : f32 to vector<8x1xf32>
    %29 = arith.divf %27, %28 : vector<8x1xf32>
    %30 = vector.broadcast %29 : vector<8x1xf32> to vector<8x64xf32>
    %31 = arith.subf %23, %30 : vector<8x64xf32>
    %32 = arith.mulf %31, %31 : vector<8x64xf32>
    %cst_17 = arith.constant dense<0.000000e+00> : vector<8xf32>
    %33 = vector.multi_reduction <add>, %32, %cst_17 [1] : vector<8x64xf32> to vector<8xf32>
    %34 = vector.shape_cast %33 : vector<8xf32> to vector<8x1xf32>
    %cst_18 = arith.constant 6.400000e+01 : f32
    %35 = vector.broadcast %cst_18 : f32 to vector<8x1xf32>
    %36 = arith.divf %34, %35 : vector<8x1xf32>
    %cst_19 = arith.constant 9.99999974E-6 : f32
    %37 = vector.broadcast %cst_19 : f32 to vector<8x1xf32>
    %38 = arith.addf %36, %37 : vector<8x1xf32>
    %39 = math.rsqrt %38 : vector<8x1xf32>
    %40 = vector.broadcast %39 : vector<8x1xf32> to vector<8x64xf32>
    %41 = arith.mulf %31, %40 : vector<8x64xf32>
    %42 = vector.broadcast %24 : vector<1x64xf32> to vector<8x64xf32>
    %43 = arith.mulf %41, %42 : vector<8x64xf32>
    %44 = vector.broadcast %25 : vector<1x64xf32> to vector<8x64xf32>
    %45 = arith.addf %43, %44 : vector<8x64xf32>
    %46 = arith.truncf %22 : vector<8x128xf32> to vector<8x128xbf16>
    %c0_20 = arith.constant 0 : index
    %c0_21 = arith.constant 0 : index
    %47 = vector.load %arg10[%c0_20, %c0_21] : memref<8x256xbf16, #tpu.memory_space<vmem>>, vector<8x128xbf16>
    tpu.vector_store %arg10[%c0_20, %c0_21], %46 {strides = array<i32>} : memref<8x256xbf16, #tpu.memory_space<vmem>>, vector<8x128xbf16>,
    %48 = arith.truncf %45 : vector<8x64xf32> to vector<8x64xbf16>
    %c0_22 = arith.constant 0 : index
    %c128 = arith.constant 128 : index
    %49 = vector.load %arg10[%c0_22, %c128] : memref<8x256xbf16, #tpu.memory_space<vmem>>, vector<8x64xbf16>
    tpu.vector_store %arg10[%c0_22, %c128], %48 {strides = array<i32>} : memref<8x256xbf16, #tpu.memory_space<vmem>>, vector<8x64xbf16>,
    %cst_23 = arith.constant 0.000000e+00 : bf16
    %50 = vector.broadcast %cst_23 : bf16 to vector<8x64xbf16>
    %c0_24 = arith.constant 0 : index
    %c192 = arith.constant 192 : index
    %51 = vector.load %arg10[%c0_24, %c192] : memref<8x256xbf16, #tpu.memory_space<vmem>>, vector<8x64xbf16>
    tpu.vector_store %arg10[%c0_24, %c192], %50 {strides = array<i32>} : memref<8x256xbf16, #tpu.memory_space<vmem>>, vector<8x64xbf16>,
    %c0_25 = arith.constant 0 : index
    %c0_26 = arith.constant 0 : index
    %52 = vector.load %arg10[%c0_25, %c0_26] : memref<8x256xbf16, #tpu.memory_space<vmem>>, vector<8x256xbf16>
    %c0_27 = arith.constant 0 : index
    %c0_28 = arith.constant 0 : index
    %53 = vector.load %arg7[%c0_27, %c0_28] : memref<256x128xbf16, #tpu.memory_space<vmem>>, vector<256x128xbf16>
    %cst_29 = arith.constant dense<0.000000e+00> : vector<8x128xf32>
    %54 = tpu.matmul %52, %53, %cst_29 {dimension_numbers = #tpu.dot_dimension_numbers<[1], [0], [0], [1], [0, 0, 1, 1], [], []>} : vector<8x256xbf16>, vector<256x128xbf16>, vector<8x128xf32> -> vector<8x128xf32>
    %c0_30 = arith.constant 0 : index
    %c0_31 = arith.constant 0 : index
    %55 = vector.load %arg8[%c0_30, %c0_31] : memref<1x128xf32, #tpu.memory_space<vmem>>, vector<1x128xf32>
    %56 = vector.broadcast %55 : vector<1x128xf32> to vector<8x128xf32>
    %57 = arith.addf %54, %56 : vector<8x128xf32>
    %c0_32 = arith.constant 0 : index
    %c0_33 = arith.constant 0 : index
    %58 = vector.load %arg9[%c0_32, %c0_33] : memref<8x128xf32, #tpu.memory_space<vmem>>, vector<8x128xf32>
    tpu.vector_store %arg9[%c0_32, %c0_33], %57 {strides = array<i32>} : memref<8x128xf32, #tpu.memory_space<vmem>>, vector<8x128xf32>,
    return
  }
  func.func @transform_0(%arg0: i32) -> (i32, i32) {
    %c0_i32 = arith.constant 0 : i32
    %c0_i32_0 = arith.constant 0 : i32
    return %arg0, %c0_i32 : i32, i32
  }
  func.func @transform_1(%arg0: i32) -> (i32, i32) {
    %c0_i32 = arith.constant 0 : i32
    %c0_i32_0 = arith.constant 0 : i32
    return %arg0, %c0_i32 : i32, i32
  }
  func.func @transform_2(%arg0: i32) -> (i32, i32) {
    %c0_i32 = arith.constant 0 : i32
    %c0_i32_0 = arith.constant 0 : i32
    %c0_i32_1 = arith.constant 0 : i32
    return %c0_i32, %c0_i32_0 : i32, i32
  }
  func.func @transform_3(%arg0: i32) -> (i32, i32) {
    %c0_i32 = arith.constant 0 : i32
    %c0_i32_0 = arith.constant 0 : i32
    %c0_i32_1 = arith.constant 0 : i32
    return %c0_i32, %c0_i32_0 : i32, i32
  }
  func.func @transform_4(%arg0: i32) -> (i32, i32) {
    %c0_i32 = arith.constant 0 : i32
    %c0_i32_0 = arith.constant 0 : i32
    %c0_i32_1 = arith.constant 0 : i32
    return %c0_i32, %c0_i32_0 : i32, i32
  }
  func.func @transform_5(%arg0: i32) -> (i32, i32) {
    %c0_i32 = arith.constant 0 : i32
    %c0_i32_0 = arith.constant 0 : i32
    %c0_i32_1 = arith.constant 0 : i32
    return %c0_i32, %c0_i32_0 : i32, i32
  }
  func.func @transform_6(%arg0: i32) -> (i32, i32) {
    %c0_i32 = arith.constant 0 : i32
    %c0_i32_0 = arith.constant 0 : i32
    %c0_i32_1 = arith.constant 0 : i32
    return %c0_i32, %c0_i32_0 : i32, i32
  }
  func.func @transform_7(%arg0: i32) -> (i32, i32) {
    %c0_i32 = arith.constant 0 : i32
    %c0_i32_0 = arith.constant 0 : i32
    %c0_i32_1 = arith.constant 0 : i32
    return %c0_i32, %c0_i32_0 : i32, i32
  }
  func.func @transform_8(%arg0: i32) -> (i32, i32) {
    %c0_i32 = arith.constant 0 : i32
    %c0_i32_0 = arith.constant 0 : i32
    return %arg0, %c0_i32 : i32, i32
  }
}

</mosaic_0001>

<bundles_post_ra>
// kernel: tpu_custom_call.1
= control target key start
LH: loop header
LB: loop body
LE: loop exit
PB: predicated region body
PF: predicated region fallthrough
CT: control target
= control target key end

     0   :  { %s1356_s0 = inlined_call_operand.hbm [shape: f32[16,128], index: 0, kind: input, shape index: {}]   ;;  %s1357_s1 = inlined_call_operand.hbm [shape: f32[16,64], index: 1, kind: input, shape index: {}]   ;;  %s1358_s2 = inlined_call_operand.vmem [shape: f32[1,128], index: 2, kind: input, shape index: {}]   ;;  %s1359_s3 = inlined_call_operand.vmem [shape: f32[1,128], index: 3, kind: input, shape index: {}]   ;;  %s1360_s4 = inlined_call_operand.vmem [shape: f32[1,64], index: 4, kind: input, shape index: {}]   ;;  %s1361_s5 = inlined_call_operand.vmem [shape: f32[1,64], index: 5, kind: input, shape index: {}]   ;;  %s1362_s6 = inlined_call_operand.hbm [shape: bf16[256,128], index: 6, kind: input, shape index: {}]   ;;  %s1363_s7 = inlined_call_operand.vmem [shape: f32[1,128], index: 7, kind: input, shape index: {}]   ;;  %s1364_s8 = inlined_call_operand.hbm [shape: f32[16,128], index: 8, kind: output, shape index: {}]  }
   0x1   :  { %1373 = sst [smem:[#allocation18_spill]] %s1362_s6 }
   0x2   :  { %13 = vsyncpa [#allocation4], 0 }
   0x3   :  { %15 = vsyncpa [#allocation4 + $0x1], 0 }
   0x4   :  { %16 = vsyncpa [#allocation7], 0 }
   0x5   :  { %18 = vsyncpa [#allocation7 + $0x1], 0 }
   0x6   :  { %19 = vsyncpa [#allocation5], 0 }
   0x7   :  { %21 = vsyncpa [#allocation5 + $0x1], 0  ;;  %s1106_s27 = smov 0   ;;  %s1108_s28 = smov 0  }
   0x8   :  { %s1110_s29 = smov 0   ;;  %s1112_s30 = smov 0  }
   0x9 LB: > { %1374 = sst [smem:[#allocation14_spill]] %s1048_s29  ;;  %s1127_s9 = sadd.s32 4294967295, %s1052_s30   ;;  %s1052_s30 = sphi %s1112_s30, %s1394_s30   ;;  %s1048_s29 = sphi %s1110_s29, %s1396_s29   ;;  %s1044_s28 = sphi %s1108_s28, %s1398_s28   ;;  %s1040_s27 = sphi %s1106_s27, %s1397_s27  }
   0xa   : > { %s741_s10 = sadd.s32 4294967294, %s1052_s30   ;;  %p47_p0 = scmp.ne.s32.totalorder %s1044_s28, %s1040_s27 }
   0xb   : > { %p1365_p1 = scmp.eq.s32.totalorder %s1127_s9, 0  ;;  %p229_p3 = scmp.eq.s32.totalorder %s741_s10, 1 }
   0xc   : > { %p742_p5 = scmp.ge.s32.totalorder %s1052_s30, 1  ;;  %p236_p7 = scmp.lt.s32.totalorder %s1052_s30, 3 }
   0xd   : > { %p1136_p4 = por %p1365_p1, %p47_p0  ;;  %p1141_p6 = por %p229_p3, %p47_p0 }
   0xe   : > { %p1146_p8 = pnand %p742_p5, %p236_p7  ;;  %s1054_s14 = smov [#allocation8]  }
   0xf   : > { %s1375_s11 = scalar_select %p1136_p4, 1, 0 }
  0x10   : > { %s1376_s12 = scalar_select %p1141_p6, 1, 0 }
  0x11   : > { %s1378_s13 = scalar_select %p1146_p8, 1, 0 }
  0x12   : > { %1377 = sst [smem:[#allocation15_spill]] %s1376_s12  ;;  %s260_s15 = sshll.u32 %s1054_s14, 4  ;;  %s1150_s15 = int_to_ptr.vmem [resolvable:$true] %s260_s15 }
  0x13   : > { %p813_p9 = pneg %p1146_p8  ;;  %s1162_s17 = sadd.s32 1, %s1052_s30  }
  0x14   : > { %1380 = sst [smem:[#allocation16_spill]] %s1162_s17  ;;  %s34_s18 = sadd.s32 1, %s1048_s29 }
  0x15   : > { %p1157_p11 = pnand %p813_p9, %p1365_p1  ;;  %s31_s19 = ssub.s32 %s1052_s30, %s1162_s17 }
  0x16   : > { %s1381_s6 = sld [smem:[#allocation18_spill]] }
  0x17   : > { %p892_p13 = pneg %p1157_p11 }
  0x1c   : > { %s890_s22 = scalar_lea.hbm %s1381_s6, 2048 }
  0x1d   : > { %p891_p12 = scmp.ne.s32.totalorder %s1381_s6, %s890_s22  ;;  %p897_p5 = scmp.lt.u32.totalorder %s890_s22, %s1381_s6 }
  0x1f   : > { %p893_p0 = pnand %p892_p13, %p891_p12 }
  0x21   : > { %p894_p3 = pneg %p893_p0 }
  0x23   : > { %p899_p7 = pnand %p897_p5, %p894_p3 }
  0x25   : > { %902 = shalt.err (!%p899_p7)
}
  0x26   : > { %s903_s10 = scalar_lea.vmem %s1150_s15, 2048  ;;  %p911_p2 = scmp.lt.s32.totalorder %s1150_s15, %s1150_s15 }
  0x27   : > { %p904_p9 = scmp.ne.s32.totalorder %s1150_s15, %s903_s10  ;;  %p912_p6 = scmp.lt.s32.totalorder %s903_s10, %s903_s10 }
  0x29   : > { %p906_p10 = pnand %p904_p9, %p892_p13  ;;  %p913_p4 = por %p912_p6, %p911_p2 }
  0x2b   : > { %p907_p1 = pneg %p906_p10 }
  0x2d   : > { %p914_p8 = pnand %p913_p4, %p907_p1 }
  0x2f   : > { %917 = shalt.err (!%p914_p8)
}
  0x30   : > { %s1055_s14 = smov 64   ;;  %s1056_s20 = smov 4  }
  0x31   : > { %816 = dma.hbm_to_vmem [thread:$0]  (!%p1157_p11), %s1381_s6, 2048, %s1150_s15, [#allocation7], %s1055_s14, %s1055_s14, %s1056_s20  }
  0x32   : > { %p32_p2 = scmp.eq.s32.totalorder %s31_s19, 0  ;;  %p41_p1 = scmp.ne.s32.totalorder %s1048_s29, %s1044_s28 }
  0x33   : > { %p42_p4 = scmp.eq.s32.totalorder %s1052_s30, 0  ;;  %p829_p6 = scmp.lt.s32.totalorder %s1052_s30, 2 }
  0x34   : > { %s1193_s23 = scalar_select %p32_p2, %s1048_s29, %s34_s18  }
  0x35   : > { %p43_p8 = por %p42_p4, %p41_p1  ;;  %p1383_p10 = scmp.eq.s32.totalorder %s1127_s9, 1 }
  0x36   : > { %1382 = sst [smem:[#allocation17_spill]] %s1193_s23  ;;  %s277_s25 = sand.u32 1, %s1048_s29  }
  0x37   : > { %p1197_p12 = por %p1383_p10, %p41_p1  ;;  %s746_s26 = sshll.u32 %s1052_s30, 7 }
  0x38   : > { %s1203_s10 = sshll.u32 %s277_s25, 3  ;;  %s1208_s15 = scalar_lea.hbm %s1356_s0, %s746_s26 }
  0x39   : > { %s1384_s24 = scalar_select %p1197_p12, 1, 0 }
  0x3a   : > { %s281_s18 = scalar_lea.vmem [#allocation3], %s1203_s10  ;;  %p1211_p11 = pnand %p829_p6, %p43_p8 }
  0x3b   : > { %s288_s19 = sshll.u32 %s281_s18, 4  ;;  %s1220_s17 = scalar_lea.hbm %s1357_s1, %s746_s26  ;;  %s1215_s19 = int_to_ptr.vmem [resolvable:$true] %s288_s19 }
  0x3c   : > { %s278_s22 = scalar_lea.sflag [#allocation4], %s277_s25  ;;  %s918_s16 = scalar_lea.hbm %s1208_s15, 128 }
  0x3d   : > { %p919_p13 = scmp.ne.s32.totalorder %s1208_s15, %s918_s16  ;;  %p920_p0 = pneg %p1211_p11 }
  0x3e   : > { %s923_s23 = scalar_lea.hbm %s1356_s0, 256  ;;  %p924_p7 = scmp.lt.u32.totalorder %s1208_s15, %s1356_s0 }
  0x3f   : > { %p921_p3 = pnand %p920_p0, %p919_p13  ;;  %p925_p9 = scmp.lt.u32.totalorder %s923_s23, %s918_s16 }
  0x40   : > { %p927_p1 = scmp.lt.u32.totalorder %s918_s16, %s1208_s15 }
  0x41   : > { %p922_p5 = pneg %p921_p3  ;;  %p926_p2 = por %p925_p9, %p924_p7 }
  0x43   : > { %p928_p4 = por %p927_p1, %p926_p2 }
  0x45   : > { %p929_p6 = pnand %p928_p4, %p922_p5 }
  0x47   : > { %932 = shalt.err (!%p929_p6)
}
  0x48   : > { %s933_s25 = scalar_lea.vmem %s1215_s19, 128  ;;  %s1057_s6 = smov [#allocation3]  }
  0x49   : > { %p934_p8 = scmp.ne.s32.totalorder %s1215_s19, %s933_s25  ;;  %s938_s26 = sshll.u32 %s1057_s6, 4  ;;  %s939_s26 = int_to_ptr.vmem [resolvable:$false] %s938_s26 }
  0x4a   : > { %s940_s29 = scalar_lea.vmem %s939_s26, 256  ;;  %p941_p3 = scmp.lt.s32.totalorder %s1215_s19, %s939_s26 }
  0x4b   : > { %p936_p10 = pnand %p934_p8, %p920_p0  ;;  %p942_p7 = scmp.lt.s32.totalorder %s940_s29, %s933_s25 }
  0x4d   : > { %p937_p13 = pneg %p936_p10  ;;  %p943_p9 = por %p942_p7, %p941_p3 }
  0x4f   : > { %p944_p2 = pnand %p943_p9, %p937_p13 }
  0x51   : > { %947 = shalt.err (!%p944_p2)
}
  0x52   : > { %820 = dma.hbm_to_vmem [thread:$0]  (!%p1211_p11), %s1208_s15, 128, %s1215_s19, %s278_s22  }
  0x53   : > { %s295_s12 = sand.u32 1, %s1052_s30   ;;  %s299_s23 = scalar_lea.vmem [#allocation6], %s1203_s10 }
  0x54   : > { %s306_s20 = sshll.u32 %s299_s23, 4  ;;  %s296_s21 = scalar_lea.sflag [#allocation7], %s295_s12  ;;  %s307_s20 = int_to_ptr.vmem [resolvable:$true] %s306_s20 }
  0x55   : > { %s948_s16 = scalar_lea.hbm %s1220_s17, 128  ;;  %s953_s6 = scalar_lea.hbm %s1357_s1, 256 }
  0x56   : > { %p949_p5 = scmp.ne.s32.totalorder %s1220_s17, %s948_s16  ;;  %p954_p6 = scmp.lt.u32.totalorder %s1220_s17, %s1357_s1 }
  0x57   : > { %p955_p8 = scmp.lt.u32.totalorder %s953_s6, %s948_s16  ;;  %p957_p13 = scmp.lt.u32.totalorder %s948_s16, %s1220_s17 }
  0x58   : > { %p951_p1 = pnand %p949_p5, %p920_p0 }
  0x59   : > { %p956_p10 = por %p955_p8, %p954_p6 }
  0x5a   : > { %p952_p4 = pneg %p951_p1 }
  0x5b   : > { %p958_p3 = por %p957_p13, %p956_p10 }
  0x5d   : > { %p959_p7 = pnand %p958_p3, %p952_p4 }
  0x5f   : > { %962 = shalt.err (!%p959_p7)
}
  0x60   : > { %s963_s10 = scalar_lea.vmem %s307_s20, 128  ;;  %s1058_s15 = smov [#allocation6]  }
  0x61   : > { %p964_p9 = scmp.ne.s32.totalorder %s307_s20, %s963_s10  ;;  %s968_s19 = sshll.u32 %s1058_s15, 4  ;;  %s969_s19 = int_to_ptr.vmem [resolvable:$false] %s968_s19 }
  0x62   : > { %s970_s22 = scalar_lea.vmem %s969_s19, 256  ;;  %p971_p1 = scmp.lt.s32.totalorder %s307_s20, %s969_s19 }
  0x63   : > { %p966_p2 = pnand %p964_p9, %p920_p0  ;;  %p972_p12 = scmp.lt.s32.totalorder %s970_s22, %s963_s10 }
  0x65   : > { %p967_p5 = pneg %p966_p2  ;;  %p973_p6 = por %p972_p12, %p971_p1 }
  0x67   : > { %p974_p8 = pnand %p973_p6, %p967_p5 }
  0x69   : > { %977 = shalt.err (!%p974_p8)
}
  0x6a   : > { %823 = dma.hbm_to_vmem [thread:$0]  (!%p1211_p11), %s1220_s17, 128, %s307_s20, %s296_s21  }
  0x6b   : > { %p1386_p4 = scmp.ne.s32.totalorder %s1378_s13, 0 }
  0x6c   : > { %s1271_s12 = sand.u32 (!%p1386_p4), 1, %s1044_s28   ;;  %p1387_p12 = scmp.ne.s32.totalorder (!%p1386_p4), %s1375_s11, 0 }
  0x6d   : > { %315 = sbr.rel (%p1386_p4) target bundleno = 685 (0x2ad), region = 52  ;;  %s1274_s23 = sshll.u32 (!%p1386_p4), %s1271_s12, 3 }
  0x6e   : > { %s318_s16 = scalar_lea.sflag (!%p1386_p4), [#allocation4], %s1271_s12  ;;  %s321_s18 = scalar_lea.vmem (!%p1386_p4), [#allocation3], %s1274_s23 }
  0x74   : > { %1023 = dma.done.wait (%p1387_p12), %s318_s16, 128  }
  0x75   : > { %1025 = vsyncadd (%p1387_p12), %s318_s16, 4294967168  ;;  %s326_s13 = sand.u32 1, %s1127_s9   ;;  %s330_s17 = scalar_lea.vmem [#allocation6], %s1274_s23 }
  0x76   : > { %s327_s14 = scalar_lea.sflag [#allocation7], %s326_s13 }
  0x77   : > { %1027 = dma.done.wait (%p1387_p12), %s327_s14, 128  }
  0x78   : > { %1029 = vsyncadd (%p1387_p12), %s327_s14, 4294967168  ;;  %p1388_p11 = scmp.eq.s32.totalorder %s1127_s9, 0 }
  0x7a   : > { %1031 = dma.done.wait (%p1388_p11), [#allocation7], 2048   ;;  %p1389_p0 = pmov %p1388_p11 }
  0x7b   : > { %vm405_vm0 = vcmask 523264   ;;  %v402_v0 = vld [vmem:[%s330_s17] sm:$0xff]  ;;  %v373_v2 = vld [vmem:[%s321_s18] sm:$0xff]  ;;  %vm437_vm1 = vcmask 519168   ;;  %vm439_vm2 = vcmask 1043968   ;;  %v1059_v47 = vmov 0  }
  0x7c   : > { %1033 = vsyncadd (%p1389_p0), [#allocation7], 4294965248  ;;  %v406_v1 = vsel %vm405_vm0, %v402_v0, 0.0  ;;  %v868_v12 = vld [vmem:[#allocation8 + $0x40] sm:$0xff]   ;;  %v870_v14 = vld [vmem:[#allocation8 + $0x48] sm:$0xff]   ;;  %s778_s22 = sshll.u32 %s1127_s9, 7 }
  0x7d   : > { %407 = vadd.xlane.f32.xlu0 %v406_v1  ;;  %v869_v13 = vld [vmem:[#allocation8] sm:$0xff]   ;;  %781 = vmatprep.subr.bf16.mxu0 %v868_v12  ;;  %v871_v15 = vld [vmem:[#allocation8 + $0x8] sm:$0xff]   ;;  %v872_v16 = vld [vmem:[#allocation8 + $0x50] sm:$0xff]   ;;  %s371_s16 = scalar_lea.vmem [#allocation9], %s1274_s23  ;;  %s1312_s17 = scalar_lea.hbm %s1364_s8, %s778_s22 }
  0x7e   : > { %782 = vmatpush3.bf16.msra.mxu0 %v869_v13  ;;  %v873_v17 = vld [vmem:[#allocation8 + $0x10] sm:$0xff]   ;;  %v874_v18 = vld [vmem:[#allocation8 + $0x58] sm:$0xff]   ;;  %v876_v20 = vld [vmem:[#allocation8 + $0x60] sm:$0xff]   ;;  %s639_s18 = sshll.u32 %s371_s16, 4  ;;  %s626_s11 = scalar_lea.sflag [#allocation5], %s1271_s12  ;;  %s1314_s18 = int_to_ptr.vmem [resolvable:$true] %s639_s18 }
  0x7f   : > { %783 = vmatprep.subr.bf16.mxu0 %v870_v14  ;;  %v875_v19 = vld [vmem:[#allocation8 + $0x18] sm:$0xff]   ;;  %v877_v21 = vld [vmem:[#allocation8 + $0x20] sm:$0xff]   ;;  %v878_v22 = vld [vmem:[#allocation8 + $0x68] sm:$0xff]   ;;  %s978_s20 = scalar_lea.vmem %s1314_s18, 128  ;;  %p1390_p13 = scmp.ne.s32.totalorder %s1384_s24, 0 }
  0x80   : > { %v879_v23 = vld [vmem:[#allocation8 + $0x28] sm:$0xff]   ;;  %v880_v24 = vld [vmem:[#allocation8 + $0x70] sm:$0xff]   ;;  %v882_v26 = vld [vmem:[#allocation8 + $0x78] sm:$0xff]   ;;  %p979_p10 = scmp.ne.s32.totalorder %s1314_s18, %s978_s20  ;;  %s1060_s9 = smov [#allocation9]  }
  0x81   : > { %376 = vadd.xlane.f32.xlu0 %v373_v2  ;;  %v881_v25 = vld [vmem:[#allocation8 + $0x30] sm:$0xff]   ;;  %v883_v27 = vld [vmem:[#allocation8 + $0x38] sm:$0xff]   ;;  %s982_s23 = sshll.u32 %s1060_s9, 4  ;;  %s983_s23 = int_to_ptr.vmem [resolvable:$false] %s982_s23 }
  0x82   : > { %784 = vmatpush3.bf16.msra.mxu0 %v871_v15  ;;  %v756_v35 = vld [vmem:[%s1360_s4] ss:$0 sm:$0xff]  ;;  %p980_p3 = pnand %p979_p10, %p1390_p13  ;;  %s984_s21 = scalar_lea.vmem %s983_s23, 256 }
  0x83   : > { %785 = vmatprep.subr.bf16.mxu0 %v872_v16  ;;  %v757_v37 = vld [vmem:[%s1361_s5] ss:$0 sm:$0xff]  ;;  %p985_p9 = scmp.lt.s32.totalorder %s1314_s18, %s983_s23  ;;  %p986_p2 = scmp.lt.s32.totalorder %s984_s21, %s978_s20 }
  0x84   : > { %v754_v40 = vld [vmem:[%s1358_s2] ss:$0 sm:$0xff]  ;;  %p981_p7 = pneg %p980_p3 }
  0x85   : > { %v755_v43 = vld [vmem:[%s1359_s3] ss:$0 sm:$0xff]  ;;  %p987_p5 = por %p986_p2, %p985_p9 }
  0x86   : > { %786 = vmatpush3.bf16.msra.mxu0 %v873_v17  ;;  %v758_v53 = vld [vmem:[%s1363_s7] ss:$0 sm:$0xff] }
  0x87   : > { %787 = vmatprep.subr.bf16.mxu0 %v874_v18  ;;  %p988_p1 = pnand %p987_p5, %p981_p7 }
  0x8a   : > { %788 = vmatpush3.bf16.msra.mxu0 %v875_v19 }
  0x8b   : > { %789 = vmatprep.subr.bf16.mxu0 %v876_v20 }
  0x8e   : > { %790 = vmatpush3.bf16.msra.mxu0 %v877_v21 }
  0x8f   : > { %791 = vmatprep.subr.bf16.mxu0 %v878_v22 }
  0x92   : > { %792 = vmatpush3.bf16.msra.mxu0 %v879_v23 }
  0x93   : > { %793 = vmatprep.subr.bf16.mxu0 %v880_v24 }
  0x96   : > { %794 = vmatpush3.bf16.msra.mxu0 %v881_v25 }
  0x97   : > { %795 = vmatprep.subr.bf16.mxu0 %v882_v26 }
  0x9a   : > { %796 = vmatpush3.bf16.msra.mxu0 %v883_v27 }
 0x10a   : > { %v408_v3 = vpop.xlane.xlu0 %407 }
 0x10b   : > { %v410_v4 = vmul.f32 0.015625, %v408_v3 }
 0x10d   : > { %v411_v5 = vsub.f32 %v402_v0, %v410_v4 }
 0x10e   : > { %v377_v6 = vpop.xlane.xlu0 %376 }
 0x10f   : > { %v379_v7 = vmul.f32 0.0078125, %v377_v6  ;;  %v412_v8 = vmul.f32 %v411_v5, %v411_v5 }
 0x111   : > { %v380_v9 = vsub.f32 %v373_v2, %v379_v7  ;;  %v413_v10 = vsel %vm405_vm0, %v412_v8, 0.0 }
 0x112   : > { %414 = vadd.xlane.f32.xlu1 %v413_v10 }
 0x113   : > { %v381_v11 = vmul.f32 %v380_v9, %v380_v9 }
 0x116   : > { %382 = vadd.xlane.f32.xlu1 %v381_v11 }
 0x19f   : > { %v415_v28 = vpop.xlane.xlu1 %414 }
 0x1a0   : > { %v416_v29 = vmul.f32 0.015625, %v415_v28 }
 0x1a2   : > { %v417_v30 = vadd.f32 1e-05, %v416_v29 }
 0x1a3   : > { %v383_v31 = vpop.xlane.xlu1 %382 }
 0x1a4   : > { %886 = vrsqrt.f32 %v417_v30  ;;  %v384_v32 = vmul.f32 0.0078125, %v383_v31 }
 0x1a6   : > { %v385_v33 = vadd.f32 1e-05, %v384_v32 }
 0x1a8   : > { %888 = vrsqrt.f32 %v385_v33 }
 0x1ae   : > { %v887_v34 = vpop.eup %886 }
 0x1af   : > { %v419_v36 = vmul.f32 %v887_v34, %v411_v5 }
 0x1b1   : > { %v426_v38 = vmul.f32 %v756_v35, %v419_v36 }
 0x1b2   : > { %v889_v39 = vpop.eup %888 }
 0x1b3   : > { %v433_v41 = vadd.f32 %v757_v37, %v426_v38  ;;  %v387_v42 = vmul.f32 %v889_v39, %v380_v9 }
 0x1b5   : > { %v436_v44 = vpack.c.bf16 %v433_v41, %v433_v41  ;;  %v394_v45 = vmul.f32 %v754_v40, %v387_v42 }
 0x1b7   : > { %438 = vst.msk [vmem:[#allocation2 + $0x4] sm:$0xf] %vm437_vm1, %v436_v44  ;;  %v401_v46 = vadd.f32 %v755_v43, %v394_v45 }
 0x1b8   : > { %440 = vst.msk [vmem:[#allocation2 + $0x4] sm:$0xf] %vm439_vm2, %v1059_v47 }
 0x1b9   : > { %v434_v48 = vpack.c.bf16 %v401_v46, %v401_v46 }
 0x1bb   : > { %435 = vst [vmem:[#allocation2] sm:$0xf] %v434_v48 }
 0x1c2   : > { %v441_v49 = vld [vmem:[#allocation2] sm:$0xff] }
 0x1c3   : > { %v759_v50 = vcombine.low %v441_v49, %v441_v49  ;;  %v760_v51 = vcombine.high %v441_v49, %v441_v49 }
 0x1c5   : > { %616 = vmatprep.mubr.bf16.mxu0 %v760_v51 }
 0x1c6   : > { %617 = vmatmul.mubr.bf16.vlgmr.msra.gmra.mrb[0].mxu0 %v759_v50 }
 0x299   : > { %v797_v52 = vpop.f32.mrb[0].mxu0 }
 0x29a   : > { %v798_v54 = vpop.f32.mrb[1].mxu0 }
 0x29b   : > { %v799_v55 = vadd.f32 %v798_v54, %v797_v52  ;;  %v800_v56 = vpop.f32.mrb[2].mxu0 }
 0x29c   : > { %v801_v57 = vpop.f32.mrb[3].mxu0 }
 0x29d   : > { %v619_v58 = vadd.f32 %v799_v55, %v758_v53 }
 0x29f   : > { %624 = vst [vmem:[%s371_s16] sm:$0xff] %v619_v58 }
 0x2a0   : > { %991 = shalt.err (!%p988_p1)
}
 0x2a1   : > { %s992_s12 = scalar_lea.hbm %s1312_s17, 128  ;;  %s996_s26 = scalar_lea.hbm %s1364_s8, 256 }
 0x2a2   : > { %p993_p6 = scmp.ne.s32.totalorder %s1312_s17, %s992_s12  ;;  %p997_p12 = scmp.lt.u32.totalorder %s1312_s17, %s1364_s8 }
 0x2a3   : > { %p998_p11 = scmp.lt.u32.totalorder %s996_s26, %s992_s12  ;;  %p1000_p10 = scmp.lt.u32.totalorder %s992_s12, %s1312_s17 }
 0x2a4   : > { %p994_p8 = pnand %p993_p6, %p1390_p13 }
 0x2a5   : > { %p999_p0 = por %p998_p11, %p997_p12 }
 0x2a6   : > { %p995_p4 = pneg %p994_p8 }
 0x2a7   : > { %p1001_p3 = por %p1000_p10, %p999_p0 }
 0x2a9   : > { %p1002_p7 = pnand %p1001_p3, %p995_p4 }
 0x2ab   : > { %1005 = shalt.err (!%p1002_p7)
}
 0x2ac   : > { %811 = dma.vmem_to_hbm [thread:$0]  (%p1390_p13), %s1314_s18, 128, %s1312_s17, %s626_s11  }
 0x2ad PF: > { %s1391_s15 = sld [smem:[#allocation15_spill]]  ;;  %s651_s19 = sand.u32 1, %s1040_s27  }
 0x2ae   : > { %p1393_p2 = scmp.ge.s32.totalorder %s1052_s30, 2  ;;  %s652_s22 = scalar_lea.sflag [#allocation5], %s651_s19 }
 0x2b3   : > { %p1392_p9 = scmp.ne.s32.totalorder %s1391_s15, 0 }
 0x2b5   : > { %p825_p5 = pnand %p1393_p2, %p1392_p9 }
 0x2b7   : > { %1035 = dma.done.wait (!%p825_p5), %s652_s22, 128  }
 0x2b8   : > { %1037 = vsyncadd (!%p825_p5), %s652_s22, 4294967168  ;;  %s1394_s30 = sld [smem:[#allocation16_spill]]  ;;  %s1395_s16 = sld [smem:[#allocation14_spill]] }
 0x2b9   : > { %s1396_s29 = sld [smem:[#allocation17_spill]]  ;;  %s1397_s27 = smov %s1044_s28 }
 0x2be   : > { %p24_p1 = scmp.ge.s32.totalorder %s1394_s30, 4   ;;  %s1398_s28 = smov %s1395_s16 }
 0x2c0   :  { %26 = sbr.rel (!%p24_p1) target bundleno = 9 (0x9), region = 114 }
 0x2c7   :  { %657 = vsyncpa [#allocation4], 1 }
 0x2c8   :  { %659 = vsyncpa [#allocation4 + $0x1], 1 }
 0x2c9   :  { %660 = vsyncpa [#allocation7], 1 }
 0x2ca   :  { %662 = vsyncpa [#allocation7 + $0x1], 1 }
 0x2cb   :  { %663 = vsyncpa [#allocation5], 1 }
 0x2cc   :  { %665 = vsyncpa [#allocation5 + $0x1], 1 }

</bundles_post_ra>
